<compile_context>
chip_gen: v5e
topology: v5e:2x2
jax: 0.10.0
libtpu: 0.0.40
codegen_flags: <defaults>
</compile_context>

<pallas_src>
import functools

import jax
import jax.numpy as jnp
from jax.experimental import pallas as pl
from jax.experimental.pallas import tpu as pltpu


def _encoder_kernel(sino_ref, weT_ref, beT_ref, feat_ref):
    # sino_ref: (1, C_in, S) f32  flattened sinogram, S = V*D in lanes (lane-dense)
    # weT_ref : (F, C_in) f32, beT_ref: (F, 1) f32
    # feat_ref: (1, F, S) bf16
    # TODO(synk): the real encoder is an external module (model.<name>.make_model); a
    # deterministic 1x1 conv is used here as a synthetic stand-in.
    feat = jnp.dot(weT_ref[...], sino_ref[0],
                   preferred_element_type=jnp.float32) + beT_ref[...]
    feat_ref[0] = feat.astype(jnp.bfloat16)


def _liif_query_kernel(feat_ref, q_ref,
                       w1f_ref, w1r_ref, b1_ref, w2_ref, b2_ref, w3_ref, b3_ref,
                       out_ref, acc_ref, *, n_view, n_det, s_chunk):
    # Grid: (batch, PP-tile, S-chunk); the S-chunk axis is the innermost reduction axis.
    # feat_ref : (1, F, s_chunk) bf16  encoder-feature chunk (S = n_view * n_det in lanes)
    # q_ref    : (1, 3, V_g, PP_T)     packed [grid_x, grid_y, square_inv] for this PP tile
    # w1f_ref  : (H1, F) bf16, w1r_ref: (H1, 1) f32, b1_ref: (H1, 1) f32
    # w2_ref   : (H2, H1) bf16, b2_ref: (H2, 1) f32
    # w3_ref   : (H2, 1) f32,  b3_ref: (1, 1) f32
    # out_ref  : (1, 1, PP_T) f32      lane-dense output tile
    # acc_ref  : (F, Q) f32 scratch    gathered q_feat accumulator (Q = V_g * PP_T in lanes)
    c = pl.program_id(2)
    n_chunks = pl.num_programs(2)
    _, _, V_g, PP_T = q_ref.shape
    Q = V_g * PP_T

    gx = q_ref[0, 0]                       # (V_g, PP_T) det-axis coord in [-1, 1]
    gy = q_ref[0, 1]                       # (V_g, PP_T) view-axis coord in [-1, 1]

    # ---- F.grid_sample(mode='nearest', padding_mode='border', align_corners=False) ----
    ix = jnp.clip(((gx + 1.0) * n_det - 1.0) * 0.5, 0.0, n_det - 1.0)
    iy = jnp.clip(((gy + 1.0) * n_view - 1.0) * 0.5, 0.0, n_view - 1.0)
    jx = jnp.round(ix)   # nearest; exact-tie rounding mode differs negligibly from torch
    jy = jnp.round(iy)
    flat_idx = (jy * n_det + jx).astype(jnp.int32).reshape(1, Q)   # lane-dense (1, Q)

    @pl.when(c == 0)
    def _():
        acc_ref[...] = jnp.zeros_like(acc_ref)

    # ---- one-hot gather for this S-chunk on the MXU (bf16 in, f32 acc) ----
    # TODO(synk): when the production CT grid has gy constant per V_g row, restrict the
    # one-hot to the detector axis (factor-V_in saving); a scalar-prefetch per-(tile,chunk)
    # hit mask could also skip empty chunks. Neither holds for the random test grid.
    local = flat_idx - c * s_chunk                                  # (1, Q) int32
    sel = jax.lax.broadcasted_iota(jnp.int32, (s_chunk, Q), 0) == local
    onehot = sel.astype(jnp.bfloat16)                               # exact 0/1 in bf16
    acc_ref[...] += jnp.dot(feat_ref[0], onehot,
                            preferred_element_type=jnp.float32)     # (F, Q)

    # ---- on the last chunk: decoder MLP + backprojection, Q in lanes ----
    @pl.when(c == n_chunks - 1)
    def _():
        sq = q_ref[0, 2]                                            # (V_g, PP_T) square_inv
        q_coord = -1.0 + (2.0 * jx + 1.0) / n_det                   # utility.make_coord
        rel = ((gx - q_coord) * n_det).reshape(1, Q)                # rel_coord

        h = jnp.dot(w1f_ref[...], acc_ref[...].astype(jnp.bfloat16),
                    preferred_element_type=jnp.float32)
        h = jnp.maximum(h + w1r_ref[...] * rel + b1_ref[...], 0.0)              # (H1, Q)
        h = jnp.dot(w2_ref[...], h.astype(jnp.bfloat16),
                    preferred_element_type=jnp.float32)
        h = jnp.maximum(h + b2_ref[...], 0.0)                                   # (H2, Q)
        # final 1-wide layer as VPU multiply + sublane reduce (avoids an N=1 MXU matmul)
        dec = jnp.sum(h * w3_ref[...], axis=0, keepdims=True) + b3_ref[...]     # (1, Q)
        # local-ensemble weighting with the single [0, 0] shift is exactly the identity.
        # backprojection: sum over views, weighted by square_inv * 1e4
        out = jnp.sum(dec.reshape(V_g, PP_T) * sq * 10000.0, axis=0)            # (PP_T,)
        out_ref[...] = out[None, None, :]


def _vmem_limit_bytes():
    # ~48 MiB of headroom against v7x's 64 MiB physical VMEM; up to ~100 MiB on v5e/v6e.
    try:
        cap = pltpu.get_tpu_info().vmem_capacity_bytes
    except Exception:  # noqa: BLE001 - fall back to the conservative (v7x) budget
        cap = 64 * 1024 * 1024
    return int(min(100 * 1024 * 1024, max(cap - 16 * 1024 * 1024, 32 * 1024 * 1024)))


def liif_forward(sinogram, grid, square_inv, scale, params, patch_size,
                 *, pp_tile=256, s_chunk=512):
    """sinogram: (B, C, V, D) NCHW; grid: (B, V_g, P*P, 2) (x, y) in [-1, 1];
    square_inv: (B, 1, V_g, P*P).  Returns (B, 1, P, P)."""
    B, C_in, V_in, D = sinogram.shape
    _, V_g, PP, _ = grid.shape
    S = V_in * D
    F = params['we'].shape[1]
    H1 = params['w1'].shape[1]
    H2 = params['w2'].shape[1]

    pp_tile = min(pp_tile, PP)
    s_chunk = min(s_chunk, S)
    assert PP % pp_tile == 0 and S % s_chunk == 0
    n_tiles = PP // pp_tile
    n_chunks = S // s_chunk

    # cell is computed in the reference forward; unused because cell_decoding=False.
    cell = 2.0 * jnp.ones_like(grid[..., :1]) / scale  # noqa: F841

    # ---- pure-glue layout prep (lane axes: S for features, PP for queries / output) ----
    sino_flat = sinogram.reshape(B, C_in, S)
    weT = params['we'].T                                   # (F, C_in)
    beT = params['be'].T                                   # (F, 1)
    w1fT = params['w1'][:F].T.astype(jnp.bfloat16)         # (H1, F)   feature columns
    w1r = params['w1'][F:].T                               # (H1, 1)   rel-coord column
    b1T = params['b1'].T                                   # (H1, 1)
    w2T = params['w2'].T.astype(jnp.bfloat16)              # (H2, H1)
    b2T = params['b2'].T                                   # (H2, 1)
    w3c = params['w3']                                     # (H2, 1)
    b3 = params['b3']                                      # (1, 1)
    qpack = jnp.stack([grid[..., 0], grid[..., 1], square_inv[:, 0]], axis=1)  # (B,3,V_g,PP)

    # ---- encoder stand-in (1x1 conv), run once per batch element ----
    feat = pl.pallas_call(
        _encoder_kernel,
        out_shape=jax.ShapeDtypeStruct((B, F, S), jnp.bfloat16),
        grid_spec=pltpu.PrefetchScalarGridSpec(
            num_scalar_prefetch=0,
            grid=(B,),
            in_specs=[
                pl.BlockSpec((1, C_in, S), lambda b: (b, 0, 0)),
                pl.BlockSpec((F, C_in), lambda b: (0, 0)),
                pl.BlockSpec((F, 1), lambda b: (0, 0)),
            ],
            out_specs=pl.BlockSpec((1, F, S), lambda b: (b, 0, 0)),
        ),
        compiler_params=pltpu.CompilerParams(dimension_semantics=("parallel",)),
    )(sino_flat, weT, beT)

    # ---- query + decode + backproject; grid = (batch, PP tiles, S chunks) ----
    # The S-chunk axis streams feat in O(s_chunk) slices (double-buffered by the pipeline),
    # so VMEM stays bounded no matter how large the sinogram is (v7x-safe).
    kernel = functools.partial(_liif_query_kernel, n_view=V_in, n_det=D, s_chunk=s_chunk)
    recon = pl.pallas_call(
        kernel,
        out_shape=jax.ShapeDtypeStruct((B, 1, PP), jnp.float32),
        grid_spec=pltpu.PrefetchScalarGridSpec(
            num_scalar_prefetch=0,
            grid=(B, n_tiles, n_chunks),
            in_specs=[
                pl.BlockSpec((1, F, s_chunk), lambda b, t, c: (b, 0, c)),
                pl.BlockSpec((1, 3, V_g, pp_tile), lambda b, t, c: (b, 0, 0, t)),
                pl.BlockSpec((H1, F), lambda b, t, c: (0, 0)),
                pl.BlockSpec((H1, 1), lambda b, t, c: (0, 0)),
                pl.BlockSpec((H1, 1), lambda b, t, c: (0, 0)),
                pl.BlockSpec((H2, H1), lambda b, t, c: (0, 0)),
                pl.BlockSpec((H2, 1), lambda b, t, c: (0, 0)),
                pl.BlockSpec((H2, 1), lambda b, t, c: (0, 0)),
                pl.BlockSpec((1, 1), lambda b, t, c: (0, 0)),
            ],
            out_specs=pl.BlockSpec((1, 1, pp_tile), lambda b, t, c: (b, 0, t)),
            scratch_shapes=[pltpu.VMEM((F, V_g * pp_tile), jnp.float32)],
        ),
        compiler_params=pltpu.CompilerParams(
            dimension_semantics=("parallel", "parallel", "arbitrary"),
            vmem_limit_bytes=_vmem_limit_bytes(),
        ),
    )(feat, qpack, w1fT, w1r, b1T, w2T, b2T, w3c, b3)

    return recon.reshape(B, 1, patch_size, patch_size)


def liif_forward_ref(sinogram, grid, square_inv, scale, params, patch_size):
    """Pure-JAX f32 reference mirroring the PyTorch forward semantics."""
    B, C_in, V_in, D = sinogram.shape
    _, V_g, PP, _ = grid.shape
    feat = jnp.einsum('bcvd,cf->bvdf', sinogram, params['we']) + params['be'][0]
    gx, gy = grid[..., 0], grid[..., 1]
    ix = jnp.clip(((gx + 1.0) * D - 1.0) * 0.5, 0.0, D - 1.0)
    iy = jnp.clip(((gy + 1.0) * V_in - 1.0) * 0.5, 0.0, V_in - 1.0)
    jx = jnp.round(ix).astype(jnp.int32)
    jy = jnp.round(iy).astype(jnp.int32)
    bidx = jnp.arange(B)[:, None, None]
    q_feat = feat[bidx, jy, jx]                                   # (B, V_g, PP, F)
    q_coord = -1.0 + (2.0 * jx.astype(jnp.float32) + 1.0) / D
    rel = (gx - q_coord) * D
    x = jnp.concatenate([q_feat, rel[..., None]], axis=-1)
    h = jax.nn.relu(x @ params['w1'] + params['b1'][0])
    h = jax.nn.relu(h @ params['w2'] + params['b2'][0])
    dec = h @ params['w3'] + params['b3'][0]                      # (B, V_g, PP, 1)
    length = jnp.abs(rel[..., None]) + 1e-4
    recon = dec * length / length                                 # identity (single shift)
    out = jnp.sum(recon[..., 0][:, None] * square_inv * 10000.0, axis=-2)   # (B, 1, PP)
    return out.reshape(B, 1, patch_size, patch_size)


def init_params(key, c_in, feat, hidden):
    ks = jax.random.split(key, 5)
    in_dim = feat + 1   # decoder_in_dim = encoder.out_dim + 1 (feat_unfold/cell_decoding off)
    return {
        'we': jax.random.normal(ks[0], (c_in, feat), jnp.float32) * 0.3,
        'be': jax.random.normal(ks[1], (1, feat), jnp.float32) * 0.1,
        'w1': jax.random.normal(ks[2], (in_dim, hidden[0]), jnp.float32) / jnp.sqrt(in_dim),
        'b1': jnp.zeros((1, hidden[0]), jnp.float32),
        'w2': jax.random.normal(ks[3], (hidden[0], hidden[1]), jnp.float32) / jnp.sqrt(hidden[0]),
        'b2': jnp.zeros((1, hidden[1]), jnp.float32),
        'w3': jax.random.normal(ks[4], (hidden[1], 1), jnp.float32) / jnp.sqrt(hidden[1]),
        'b3': jnp.zeros((1, 1), jnp.float32),
    }


if __name__ == "__main__":
    key = jax.random.PRNGKey(0)
    B, C_in, V, D = 2, 4, 16, 128        # batch, sinogram channels, views, detectors (lane-dense D)
    P = 16                               # patch_size -> output (B, 1, P, P); P*P = 256 (lane-dense)
    PP = P * P
    FEAT, HIDDEN = 16, (32, 32)
    scale = 2.0

    k1, k2, k3, k4 = jax.random.split(key, 4)
    sinogram = jax.random.normal(k1, (B, C_in, V, D), jnp.float32)                 # NCHW
    grid = jax.random.uniform(k2, (B, V, PP, 2), jnp.float32, -1.0, 1.0)           # (x, y)
    square_inv = jax.random.uniform(k3, (B, 1, V, PP), jnp.float32, 0.5, 1.5) * 1e-4
    params = init_params(k4, C_in, FEAT, HIDDEN)

    out = liif_forward(sinogram, grid, square_inv, scale, params, patch_size=P)
    out = jax.block_until_ready(out)
    assert out.shape == (B, 1, P, P)
    assert bool(jnp.all(jnp.isfinite(out)))

    ref = liif_forward_ref(sinogram, grid, square_inv, scale, params, patch_size=P)
    assert jnp.allclose(out, ref, rtol=5e-2, atol=2e-1), (
        f"max abs err {float(jnp.max(jnp.abs(out - ref)))}")

    # TODO(synk): decoder-is-None bilinear grid_sample branch and the
    # feat_unfold / ensembling / cell_decoding=True variants are not exercised
    # (constructor defaults select the path implemented above).
    print("KERNEL_OK")
</pallas_src>

<mosaic_0001>
module attributes {stable_mosaic.version = 11 : i64} {
  func.func @_encoder_kernel(%arg0: i32, %arg1: memref<1x4x2048xf32, #tpu.memory_space<vmem>>, %arg2: memref<16x4xf32, #tpu.memory_space<vmem>>, %arg3: memref<16x1xf32, #tpu.memory_space<vmem>>, %arg4: memref<1x16x2048xbf16, #tpu.memory_space<vmem>>) attributes {dimension_semantics = [#tpu.dimension_semantics<parallel>], iteration_bounds = array<i64: 2>, scalar_prefetch = 0 : i64, scratch_operands = 0 : i64, tpu.core_type = #tpu.core_type<tc>, window_params = [{transform_indices = @transform_0, window_bounds = array<i64: 1, 4, 2048>}, {pipeline_mode = #tpu.pipeline_mode<synchronous>, transform_indices = @transform_1, window_bounds = array<i64: 16, 4>}, {pipeline_mode = #tpu.pipeline_mode<synchronous>, transform_indices = @transform_2, window_bounds = array<i64: 16, 1>}, {transform_indices = @transform_3, window_bounds = array<i64: 1, 16, 2048>}]} {
    %c0 = arith.constant 0 : index
    %c0_0 = arith.constant 0 : index
    %0 = vector.load %arg2[%c0, %c0_0] : memref<16x4xf32, #tpu.memory_space<vmem>>, vector<16x4xf32>
    %c0_1 = arith.constant 0 : index
    %c0_2 = arith.constant 0 : index
    %c0_3 = arith.constant 0 : index
    %1 = vector.load %arg1[%c0_1, %c0_2, %c0_3] : memref<1x4x2048xf32, #tpu.memory_space<vmem>>, vector<1x4x2048xf32>
    %2 = vector.shape_cast %1 : vector<1x4x2048xf32> to vector<4x2048xf32>
    %cst = arith.constant dense<0.000000e+00> : vector<16x2048xf32>
    %3 = tpu.matmul %0, %2, %cst {dimension_numbers = #tpu.dot_dimension_numbers<[1], [0], [0], [1], [0, 0, 1, 1], [], []>} : vector<16x4xf32>, vector<4x2048xf32>, vector<16x2048xf32> -> vector<16x2048xf32>
    %c0_4 = arith.constant 0 : index
    %c0_5 = arith.constant 0 : index
    %4 = vector.load %arg3[%c0_4, %c0_5] : memref<16x1xf32, #tpu.memory_space<vmem>>, vector<16x1xf32>
    %5 = vector.broadcast %4 : vector<16x1xf32> to vector<16x2048xf32>
    %6 = arith.addf %3, %5 : vector<16x2048xf32>
    %7 = arith.truncf %6 : vector<16x2048xf32> to vector<16x2048xbf16>
    %c0_6 = arith.constant 0 : index
    %c0_7 = arith.constant 0 : index
    %c0_8 = arith.constant 0 : index
    %8 = vector.load %arg4[%c0_6, %c0_7, %c0_8] : memref<1x16x2048xbf16, #tpu.memory_space<vmem>>, vector<1x16x2048xbf16>
    %9 = vector.shape_cast %8 : vector<1x16x2048xbf16> to vector<16x2048xbf16>
    %10 = vector.shape_cast %7 : vector<16x2048xbf16> to vector<1x16x2048xbf16>
    tpu.vector_store %arg4[%c0_6, %c0_7, %c0_8], %10 {strides = array<i32>} : memref<1x16x2048xbf16, #tpu.memory_space<vmem>>, vector<1x16x2048xbf16>,
    return
  }
  func.func @transform_0(%arg0: i32) -> (i32, i32, i32) {
    %c0_i32 = arith.constant 0 : i32
    %c0_i32_0 = arith.constant 0 : i32
    %c0_i32_1 = arith.constant 0 : i32
    return %arg0, %c0_i32, %c0_i32_0 : i32, i32, i32
  }
  func.func @transform_1(%arg0: i32) -> (i32, i32) {
    %c0_i32 = arith.constant 0 : i32
    %c0_i32_0 = arith.constant 0 : i32
    %c0_i32_1 = arith.constant 0 : i32
    return %c0_i32, %c0_i32_0 : i32, i32
  }
  func.func @transform_2(%arg0: i32) -> (i32, i32) {
    %c0_i32 = arith.constant 0 : i32
    %c0_i32_0 = arith.constant 0 : i32
    %c0_i32_1 = arith.constant 0 : i32
    return %c0_i32, %c0_i32_0 : i32, i32
  }
  func.func @transform_3(%arg0: i32) -> (i32, i32, i32) {
    %c0_i32 = arith.constant 0 : i32
    %c0_i32_0 = arith.constant 0 : i32
    %c0_i32_1 = arith.constant 0 : i32
    return %arg0, %c0_i32, %c0_i32_0 : i32, i32, i32
  }
}

</mosaic_0001>

<bundles_post_ra>
// kernel: tpu_custom_call.1
= control target key start
LH: loop header
LB: loop body
LE: loop exit
PB: predicated region body
PF: predicated region fallthrough
CT: control target
= control target key end

     0   :  { %8 = vsyncpa [#allocation3], 0  ;;  %s1281_s0 = inlined_call_operand.hbm [shape: f32[2,4,2048], index: 0, kind: input, shape index: {}]   ;;  %s1282_s1 = inlined_call_operand.vmem [shape: f32[16,4], index: 1, kind: input, shape index: {}]   ;;  %s1283_s2 = inlined_call_operand.vmem [shape: f32[16,1], index: 2, kind: input, shape index: {}]   ;;  %s1284_s3 = inlined_call_operand.hbm [shape: bf16[2,16,2048], index: 3, kind: output, shape index: {}]  }
   0x1   :  { %10 = vsyncpa [#allocation3 + $0x1], 0 }
   0x2   :  { %11 = vsyncpa [#allocation4], 0 }
   0x3   :  { %13 = vsyncpa [#allocation4 + $0x1], 0  ;;  %s1010_s12 = smov 0   ;;  %s1012_s13 = smov 0  }
   0x4   :  { %s1014_s14 = smov 0   ;;  %s1016_s15 = smov 0  }
   0x5 LB: > { %s1031_s16 = sadd.s32 4294967295, %s985_s15   ;;  %s775_s17 = sadd.s32 4294967294, %s985_s15   ;;  %s985_s15 = sphi %s1016_s15, %s1294_s15   ;;  %s981_s14 = sphi %s1014_s14, %s1293_s14   ;;  %s977_s13 = sphi %s1012_s13, %s1292_s13   ;;  %s973_s12 = sphi %s1010_s12, %s1291_s12  }
   0x6   : > { %s1035_s18 = sadd.s32 1, %s985_s15   ;;  %s26_s19 = sadd.s32 1, %s981_s14 }
   0x7   : > { %s23_s20 = ssub.s32 %s985_s15, %s1035_s18  ;;  %p33_p0 = scmp.ne.s32.totalorder %s981_s14, %s977_s13 }
   0x8   : > { %p24_p1 = scmp.eq.s32.totalorder %s23_s20, 0  ;;  %p34_p2 = scmp.eq.s32.totalorder %s985_s15, 0 }
   0x9   : > { %p39_p3 = scmp.ne.s32.totalorder %s977_s13, %s973_s12  ;;  %p40_p4 = scmp.eq.s32.totalorder %s1031_s16, 0 }
   0xa   : > { %s1047_s21 = scalar_select %p24_p1, %s981_s14, %s26_s19  }
   0xb   : > { %p1049_p5 = por %p34_p2, %p33_p0  ;;  %p1053_p6 = por %p40_p4, %p39_p3 }
   0xc   : > { %p105_p7 = scmp.eq.s32.totalorder %s1031_s16, 1  ;;  %p111_p8 = scmp.eq.s32.totalorder %s775_s17, 1 }
   0xd   : > { %p851_p10 = scmp.lt.s32.totalorder %s985_s15, 2  ;;  %s137_s26 = sand.u32 1, %s981_s14  }
   0xe   : > { %p1060_p11 = por %p105_p7, %p33_p0  ;;  %p1064_p12 = por %p111_p8, %p39_p3 }
   0xf   : > { %s837_s27 = sshll.u32 %s985_s15, 6  ;;  %s778_s28 = sshll.u32 %s137_s26, 6 }
  0x10   : > { %s146_s4 = scalar_lea.hbm %s1281_s0, %s837_s27  ;;  %s141_s6 = scalar_lea.vmem [#allocation2], %s778_s28 }
  0x11   : > { %s148_s5 = sshll.u32 %s146_s4, 4  ;;  %s150_s7 = sshll.u32 %s141_s6, 4  ;;  %s149_s5 = int_to_ptr.hbm [resolvable:$true] %s148_s5  ;;  %s151_s7 = int_to_ptr.vmem [resolvable:$true] %s150_s7 }
  0x12   : > { %p1075_p13 = pnand %p851_p10, %p1049_p5  ;;  %p781_p0 = scmp.ge.s32.totalorder %s985_s15, 1 }
  0x13   : > { %p155_p1 = scmp.lt.s32.totalorder %s985_s15, 3  ;;  %s138_s9 = scalar_lea.sflag [#allocation3], %s137_s26 }
  0x14   : > { %s889_s10 = sshra.s32 %s149_s5, 4  ;;  %p893_p3 = pneg %p1075_p13  ;;  %s890_s10 = int_to_ptr.hbm [resolvable:$true] %s889_s10 }
  0x15   : > { %s891_s11 = scalar_lea.hbm %s890_s10, 64  ;;  %s896_s20 = scalar_lea.hbm %s1281_s0, 128 }
  0x16   : > { %p892_p2 = scmp.ne.s32.totalorder %s890_s10, %s891_s11  ;;  %p897_p5 = scmp.lt.s32.totalorder %s890_s10, %s1281_s0 }
  0x17   : > { %p898_p8 = scmp.lt.s32.totalorder %s896_s20, %s891_s11 }
  0x18   : > { %p894_p4 = pnand %p893_p3, %p892_p2 }
  0x19   : > { %p899_p10 = por %p898_p8, %p897_p5 }
  0x1a   : > { %p895_p7 = pneg %p894_p4 }
  0x1c   : > { %p900_p9 = pnand %p899_p10, %p895_p7 }
  0x1e   : > { %903 = shalt.err (!%p900_p9)
}
  0x1f   : > { %846 = dma.hbm_to_vmem [thread:$0]  (!%p1075_p13), %s149_s5, 1024, %s151_s7, %s138_s9  }
  0x20   : > { %p156_p2 = pnand %p781_p0, %p155_p1 }
  0x21   : > { %s1096_s26 = sand.u32 (!%p156_p2), 1, %s977_s13  }
  0x22   : > { %159 = sbr.rel (%p156_p2) target bundleno = 248 (0xf8), region = 32  ;;  %s782_s28 = sshll.u32 (!%p156_p2), %s1096_s26, 6 }
  0x23   : > { %s162_s29 = scalar_lea.sflag (!%p156_p2), [#allocation3], %s1096_s26  ;;  %s1100_s30 = scalar_lea.vmem (!%p156_p2), [#allocation2], %s782_s28 }
  0x27   : > { %964 = dma.done.wait (%p1053_p6), %s162_s29, 1024  }
  0x28   : > { %966 = vsyncadd (%p1053_p6), %s162_s29, 4294966272  ;;  %v987_v0 = vmov 0   ;;  %v191_v1 = vld [vmem:[%s1100_s30] sm:$0xff]  ;;  %v192_v2 = vld [vmem:[%s1100_s30 + $0x8] sm:$0xff]  ;;  %vm253_vm0 = vcmask 1043456   ;;  %vm246_vm1 = vcmask 31744  }
  0x29   : > { %888 = vset.pattern.permute.xlu0 %v987_v0  ;;  %219 = vst [vmem:[#allocation1] ss:$2 sm:$0xff] %v191_v1  ;;  %v194_v3 = vld [vmem:[%s1100_s30 + $0x18] sm:$0xff]  ;;  %v193_v4 = vld [vmem:[%s1100_s30 + $0x10] sm:$0xff]  ;;  %v195_v6 = vld [vmem:[%s1100_s30 + $0x20] sm:$0xff]  ;;  %s783_s11 = sshll.u32 %s1096_s26, 7 }
  0x2a   : > { %221 = vst [vmem:[#allocation1 + $0x10] ss:$2 sm:$0xff] %v192_v2  ;;  %v199_v5 = vld [vmem:[%s1283_s2] sm:$0xff]  ;;  %v196_v7 = vld [vmem:[%s1100_s30 + $0x28] sm:$0xff]  ;;  %v197_v16 = vld [vmem:[%s1100_s30 + $0x30] sm:$0xff]  ;;  %s1197_s17 = scalar_lea.vmem [#allocation5], %s783_s11 }
  0x2b   : > { %225 = vst [vmem:[#allocation1 + $0x30] ss:$2 sm:$0xff] %v194_v3  ;;  %203 = vperm.xlu0 %888, %v199_v5   ;;  %v1118_v8 = vld [vmem:[%s1282_s1] sm:$0xff]  ;;  %v200_v18 = vld [vmem:[%s1283_s2 + $0x8] sm:$0xff]  ;;  %s838_s19 = sshll.u32 %s1031_s16, 7  ;;  %s699_s28 = sshll.u32 %s1197_s17, 4  ;;  %s700_s28 = int_to_ptr.vmem [resolvable:$true] %s699_s28 }
  0x2c   : > { %223 = vst [vmem:[#allocation1 + $0x20] ss:$2 sm:$0xff] %v193_v4  ;;  %v198_v12 = vld [vmem:[%s1100_s30 + $0x38] sm:$0xff]  ;;  %v190_v20 = vld [vmem:[%s1282_s1 + $0x8] sm:$0xff]  ;;  %s698_s27 = scalar_lea.hbm %s1284_s3, %s838_s19  ;;  %s687_s16 = scalar_lea.sflag [#allocation4], %s1096_s26 }
  0x2d   : > { %s701_s29 = sshll.u32 %s698_s27, 4  ;;  %s939_s6 = scalar_lea.hbm %s1284_s3, 256  ;;  %s702_s29 = int_to_ptr.hbm [resolvable:$true] %s701_s29 }
  0x2e   : > { %s933_s30 = sshra.s32 %s702_s29, 4  ;;  %s934_s30 = int_to_ptr.hbm [resolvable:$true] %s933_s30 }
  0x2f   : > { %s935_s4 = scalar_lea.hbm %s934_s30, 128  ;;  %p940_p0 = scmp.lt.s32.totalorder %s934_s30, %s1284_s3 }
  0x30   : > { %v226_v9 = vld.sshfl [vmem:[#allocation1] sm:$0xff pattern:$0x75316420]  ;;  %v227_v10 = vld.sshfl [vmem:[#allocation1 + $0x8] sm:$0xff pattern:$0x75316420]  ;;  %p936_p6 = scmp.ne.s32.totalorder %s934_s30, %s935_s4  ;;  %p941_p1 = scmp.lt.s32.totalorder %s939_s6, %s935_s4 }
  0x31   : > { %784 = vmatpush.msk.msra.mxu0 %vm253_vm0, %v226_v9  ;;  %234 = vst [vmem:[#allocation1] ss:$2 sm:$0xff] %v195_v6  ;;  %787 = vmatpush.msk.msra.mxu1 %vm253_vm0, %v227_v10  ;;  %v228_v11 = vld.sshfl [vmem:[#allocation1 + $0x10] sm:$0xff pattern:$0x75316420] }
  0x32   : > { %790 = vmatpush.msk.msra.mxu2 %vm253_vm0, %v228_v11  ;;  %v229_v13 = vld.sshfl [vmem:[#allocation1 + $0x18] sm:$0xff pattern:$0x75316420]  ;;  %785 = vmatmul.msk.f32.vlgmr.msra.gmra.mxu0 %vm246_vm1, %v1118_v8  ;;  %v232_v14 = vld.sshfl [vmem:[#allocation1 + $0x30] sm:$0xff pattern:$0x75316420]  ;;  %p937_p9 = pnand %p936_p6, %p1060_p11  ;;  %p942_p3 = por %p941_p1, %p940_p0 }
  0x33   : > { %235 = vst [vmem:[#allocation1 + $0x10] ss:$2 sm:$0xff] %v196_v7  ;;  %793 = vmatpush.msk.msra.mxu3 %vm253_vm0, %v229_v13  ;;  %788 = vmatmul.msk.f32.vlgmr.msra.gmra.mxu1 %vm246_vm1, %v1118_v8  ;;  %v233_v15 = vld.sshfl [vmem:[#allocation1 + $0x38] sm:$0xff pattern:$0x75316420] }
  0x34   : > { %791 = vmatmul.msk.f32.vlgmr.msra.gmra.mxu2 %vm246_vm1, %v1118_v8  ;;  %794 = vmatmul.msk.f32.vlgmr.msra.gmra.mxu3 %vm246_vm1, %v1118_v8  ;;  %237 = vst [vmem:[#allocation1 + $0x30] ss:$2 sm:$0xff] %v198_v12  ;;  %v230_v17 = vld.sshfl [vmem:[#allocation1 + $0x20] sm:$0xff pattern:$0x75316420]  ;;  %p938_p13 = pneg %p937_p9 }
  0x35   : > { %802 = vmatpush.msk.msrb.mxu2 %vm253_vm0, %v232_v14  ;;  %805 = vmatpush.msk.msrb.mxu3 %vm253_vm0, %v233_v15  ;;  %v231_v19 = vld.sshfl [vmem:[#allocation1 + $0x28] sm:$0xff pattern:$0x75316420] }
  0x36   : > { %796 = vmatpush.msk.msrb.mxu0 %vm253_vm0, %v230_v17  ;;  %236 = vst [vmem:[#allocation1 + $0x20] ss:$2 sm:$0xff] %v197_v16  ;;  %799 = vmatpush.msk.msrb.mxu1 %vm253_vm0, %v231_v19  ;;  %p943_p4 = pnand %p942_p3, %p938_p13 }
  0x37   : > { %208 = vperm.xlu0 %888, %v200_v18  }
  0x38   : > { %v238_v21 = vld.sshfl [vmem:[#allocation1] sm:$0xff pattern:$0x75316420]  ;;  %v239_v22 = vld.sshfl [vmem:[#allocation1 + $0x8] sm:$0xff pattern:$0x75316420] }
  0x39   : > { %808 = vmatpush.msk.msra.mxu0 %vm253_vm0, %v238_v21  ;;  %811 = vmatpush.msk.msra.mxu1 %vm253_vm0, %v239_v22 }
  0x3a   : > { %786 = vmatmul.msk.f32.gmra.mxu0 %vm246_vm1, %v190_v20  ;;  %v240_v23 = vld.sshfl [vmem:[#allocation1 + $0x10] sm:$0xff pattern:$0x75316420]  ;;  %v241_v24 = vld.sshfl [vmem:[#allocation1 + $0x18] sm:$0xff pattern:$0x75316420] }
  0x3b   : > { %789 = vmatmul.msk.f32.gmra.mxu1 %vm246_vm1, %v190_v20  ;;  %814 = vmatpush.msk.msra.mxu2 %vm253_vm0, %v240_v23  ;;  %v244_v26 = vld.sshfl [vmem:[#allocation1 + $0x30] sm:$0xff pattern:$0x75316420]  ;;  %v245_v27 = vld.sshfl [vmem:[#allocation1 + $0x38] sm:$0xff pattern:$0x75316420] }
  0x3c   : > { %792 = vmatmul.msk.f32.gmra.mxu2 %vm246_vm1, %v190_v20  ;;  %795 = vmatmul.msk.f32.gmra.mxu3 %vm246_vm1, %v190_v20 }
  0x3d   : > { %817 = vmatpush.msk.msra.mxu3 %vm253_vm0, %v241_v24  ;;  %v242_v25 = vld.sshfl [vmem:[#allocation1 + $0x20] sm:$0xff pattern:$0x75316420]  ;;  %v243_v28 = vld.sshfl [vmem:[#allocation1 + $0x28] sm:$0xff pattern:$0x75316420] }
  0x42   : > { %797 = vmatmul.msk.f32.vlgmr.msrb.gmra.mxu0 %vm246_vm1, %v1118_v8 }
  0x43   : > { %800 = vmatmul.msk.f32.vlgmr.msrb.gmra.mxu1 %vm246_vm1, %v1118_v8  ;;  %820 = vmatpush.msk.msrb.mxu0 %vm253_vm0, %v242_v25 }
  0x44   : > { %803 = vmatmul.msk.f32.vlgmr.msrb.gmra.mxu2 %vm246_vm1, %v1118_v8  ;;  %806 = vmatmul.msk.f32.vlgmr.msrb.gmra.mxu3 %vm246_vm1, %v1118_v8 }
  0x45   : > { %826 = vmatpush.msk.msrb.mxu2 %vm253_vm0, %v244_v26  ;;  %829 = vmatpush.msk.msrb.mxu3 %vm253_vm0, %v245_v27 }
  0x46   : > { %823 = vmatpush.msk.msrb.mxu1 %vm253_vm0, %v243_v28 }
  0x4a   : > { %798 = vmatmul.msk.f32.gmra.mxu0 %vm246_vm1, %v190_v20 }
  0x4b   : > { %801 = vmatmul.msk.f32.gmra.mxu1 %vm246_vm1, %v190_v20 }
  0x4c   : > { %804 = vmatmul.msk.f32.gmra.mxu2 %vm246_vm1, %v190_v20  ;;  %807 = vmatmul.msk.f32.gmra.mxu3 %vm246_vm1, %v190_v20 }
  0x52   : > { %809 = vmatmul.msk.f32.vlgmr.msra.gmra.mxu0 %vm246_vm1, %v1118_v8 }
  0x53   : > { %812 = vmatmul.msk.f32.vlgmr.msra.gmra.mxu1 %vm246_vm1, %v1118_v8 }
  0x54   : > { %815 = vmatmul.msk.f32.vlgmr.msra.gmra.mxu2 %vm246_vm1, %v1118_v8  ;;  %818 = vmatmul.msk.f32.vlgmr.msra.gmra.mxu3 %vm246_vm1, %v1118_v8 }
  0x5a   : > { %810 = vmatmul.msk.f32.gmra.mxu0 %vm246_vm1, %v190_v20 }
  0x5b   : > { %813 = vmatmul.msk.f32.gmra.mxu1 %vm246_vm1, %v190_v20 }
  0x5c   : > { %816 = vmatmul.msk.f32.gmra.mxu2 %vm246_vm1, %v190_v20  ;;  %819 = vmatmul.msk.f32.gmra.mxu3 %vm246_vm1, %v190_v20 }
  0x62   : > { %821 = vmatmul.msk.f32.vlgmr.msrb.gmra.mxu0 %vm246_vm1, %v1118_v8 }
  0x63   : > { %824 = vmatmul.msk.f32.vlgmr.msrb.gmra.mxu1 %vm246_vm1, %v1118_v8 }
  0x64   : > { %827 = vmatmul.msk.f32.vlgmr.msrb.gmra.mxu2 %vm246_vm1, %v1118_v8  ;;  %830 = vmatmul.msk.f32.vlgmr.msrb.gmra.mxu3 %vm246_vm1, %v1118_v8 }
  0x6a   : > { %822 = vmatmul.msk.f32.gmra.mxu0 %vm246_vm1, %v190_v20 }
  0x6b   : > { %825 = vmatmul.msk.f32.gmra.mxu1 %vm246_vm1, %v190_v20 }
  0x6c   : > { %828 = vmatmul.msk.f32.gmra.mxu2 %vm246_vm1, %v190_v20  ;;  %831 = vmatmul.msk.f32.gmra.mxu3 %vm246_vm1, %v190_v20 }
  0x9d   : > { %v1192_v29 = vpop.permute.xlu0 %203 }
  0xa9   : > { %v1200_v35 = vpop.permute.xlu0 %208 }
  0xaf   : > { %v303_v30 = vpop.f32.mrf.mxu0 }
  0xb0   : > { %v326_v31 = vpop.f32.mrf.mxu1  ;;  %v304_v32 = vadd.f32 %v303_v30, %v1192_v29 }
  0xb1   : > { %v327_v33 = vadd.f32 %v326_v31, %v1192_v29 }
  0xb3   : > { %v654_v34 = vpack.c.bf16 %v327_v33, %v304_v32 }
  0xb5   : > { %670 = vst [vmem:[%s1197_s17] sm:$0xff] %v654_v34 }
  0xb7   : > { %v349_v36 = vpop.f32.mrf.mxu2  ;;  %v372_v37 = vpop.f32.mrf.mxu3 }
  0xb8   : > { %v350_v38 = vadd.f32 %v349_v36, %v1192_v29  ;;  %v373_v39 = vadd.f32 %v372_v37, %v1192_v29  ;;  %v306_v40 = vpop.f32.mrf.mxu0  ;;  %v329_v41 = vpop.f32.mrf.mxu1 }
  0xb9   : > { %v307_v42 = vadd.f32 %v306_v40, %v1200_v35  ;;  %v330_v43 = vadd.f32 %v329_v41, %v1200_v35 }
  0xba   : > { %v655_v44 = vpack.c.bf16 %v373_v39, %v350_v38 }
  0xbb   : > { %v662_v45 = vpack.c.bf16 %v330_v43, %v307_v42 }
  0xbc   : > { %671 = vst [vmem:[%s1197_s17 + $0x8] sm:$0xff] %v655_v44 }
  0xbd   : > { %678 = vst [vmem:[%s1197_s17 + $0x40] sm:$0xff] %v662_v45 }
  0xbf   : > { %v352_v46 = vpop.f32.mrf.mxu2  ;;  %v375_v47 = vpop.f32.mrf.mxu3 }
  0xc0   : > { %v353_v48 = vadd.f32 %v352_v46, %v1200_v35  ;;  %v376_v49 = vadd.f32 %v375_v47, %v1200_v35  ;;  %v395_v50 = vpop.f32.mrf.mxu0  ;;  %v418_v51 = vpop.f32.mrf.mxu1 }
  0xc1   : > { %v396_v52 = vadd.f32 %v395_v50, %v1192_v29  ;;  %v419_v53 = vadd.f32 %v418_v51, %v1192_v29 }
  0xc2   : > { %v663_v54 = vpack.c.bf16 %v376_v49, %v353_v48 }
  0xc3   : > { %v656_v55 = vpack.c.bf16 %v419_v53, %v396_v52 }
  0xc4   : > { %679 = vst [vmem:[%s1197_s17 + $0x48] sm:$0xff] %v663_v54 }
  0xc5   : > { %672 = vst [vmem:[%s1197_s17 + $0x10] sm:$0xff] %v656_v55 }
  0xc7   : > { %v441_v56 = vpop.f32.mrf.mxu2  ;;  %v464_v57 = vpop.f32.mrf.mxu3 }
  0xc8   : > { %v442_v58 = vadd.f32 %v441_v56, %v1192_v29  ;;  %v465_v59 = vadd.f32 %v464_v57, %v1192_v29  ;;  %v398_v60 = vpop.f32.mrf.mxu0  ;;  %v421_v61 = vpop.f32.mrf.mxu1 }
  0xc9   : > { %v399_v62 = vadd.f32 %v398_v60, %v1200_v35  ;;  %v422_v63 = vadd.f32 %v421_v61, %v1200_v35 }
  0xca   : > { %v657_v0 = vpack.c.bf16 %v465_v59, %v442_v58 }
  0xcb   : > { %v664_v1 = vpack.c.bf16 %v422_v63, %v399_v62 }
  0xcc   : > { %673 = vst [vmem:[%s1197_s17 + $0x18] sm:$0xff] %v657_v0 }
  0xcd   : > { %680 = vst [vmem:[%s1197_s17 + $0x50] sm:$0xff] %v664_v1 }
  0xcf   : > { %v444_v2 = vpop.f32.mrf.mxu2  ;;  %v467_v3 = vpop.f32.mrf.mxu3 }
  0xd0   : > { %v445_v4 = vadd.f32 %v444_v2, %v1200_v35  ;;  %v468_v5 = vadd.f32 %v467_v3, %v1200_v35  ;;  %v487_v6 = vpop.f32.mrf.mxu0  ;;  %v510_v7 = vpop.f32.mrf.mxu1 }
  0xd1   : > { %v488_v8 = vadd.f32 %v487_v6, %v1192_v29  ;;  %v511_v9 = vadd.f32 %v510_v7, %v1192_v29 }
  0xd2   : > { %v665_v10 = vpack.c.bf16 %v468_v5, %v445_v4 }
  0xd3   : > { %v658_v11 = vpack.c.bf16 %v511_v9, %v488_v8 }
  0xd4   : > { %681 = vst [vmem:[%s1197_s17 + $0x58] sm:$0xff] %v665_v10 }
  0xd5   : > { %674 = vst [vmem:[%s1197_s17 + $0x20] sm:$0xff] %v658_v11 }
  0xd7   : > { %v533_v12 = vpop.f32.mrf.mxu2  ;;  %v556_v13 = vpop.f32.mrf.mxu3 }
  0xd8   : > { %v534_v14 = vadd.f32 %v533_v12, %v1192_v29  ;;  %v557_v15 = vadd.f32 %v556_v13, %v1192_v29  ;;  %v490_v16 = vpop.f32.mrf.mxu0  ;;  %v513_v17 = vpop.f32.mrf.mxu1 }
  0xd9   : > { %v491_v18 = vadd.f32 %v490_v16, %v1200_v35  ;;  %v514_v19 = vadd.f32 %v513_v17, %v1200_v35 }
  0xda   : > { %v659_v20 = vpack.c.bf16 %v557_v15, %v534_v14 }
  0xdb   : > { %v666_v21 = vpack.c.bf16 %v514_v19, %v491_v18 }
  0xdc   : > { %675 = vst [vmem:[%s1197_s17 + $0x28] sm:$0xff] %v659_v20 }
  0xdd   : > { %682 = vst [vmem:[%s1197_s17 + $0x60] sm:$0xff] %v666_v21 }
  0xdf   : > { %v536_v22 = vpop.f32.mrf.mxu2  ;;  %v559_v23 = vpop.f32.mrf.mxu3 }
  0xe0   : > { %v537_v24 = vadd.f32 %v536_v22, %v1200_v35  ;;  %v560_v25 = vadd.f32 %v559_v23, %v1200_v35  ;;  %v579_v26 = vpop.f32.mrf.mxu0  ;;  %v602_v27 = vpop.f32.mrf.mxu1 }
  0xe1   : > { %v580_v28 = vadd.f32 %v579_v26, %v1192_v29  ;;  %v603_v30 = vadd.f32 %v602_v27, %v1192_v29 }
  0xe2   : > { %v667_v31 = vpack.c.bf16 %v560_v25, %v537_v24 }
  0xe3   : > { %v660_v32 = vpack.c.bf16 %v603_v30, %v580_v28 }
  0xe4   : > { %683 = vst [vmem:[%s1197_s17 + $0x68] sm:$0xff] %v667_v31 }
  0xe5   : > { %676 = vst [vmem:[%s1197_s17 + $0x30] sm:$0xff] %v660_v32 }
  0xe7   : > { %v625_v33 = vpop.f32.mrf.mxu2  ;;  %v648_v34 = vpop.f32.mrf.mxu3 }
  0xe8   : > { %v626_v36 = vadd.f32 %v625_v33, %v1192_v29  ;;  %v649_v37 = vadd.f32 %v648_v34, %v1192_v29  ;;  %v582_v38 = vpop.f32.mrf.mxu0  ;;  %v605_v39 = vpop.f32.mrf.mxu1 }
  0xe9   : > { %v583_v40 = vadd.f32 %v582_v38, %v1200_v35  ;;  %v606_v41 = vadd.f32 %v605_v39, %v1200_v35 }
  0xea   : > { %v661_v42 = vpack.c.bf16 %v649_v37, %v626_v36 }
  0xeb   : > { %v668_v43 = vpack.c.bf16 %v606_v41, %v583_v40 }
  0xec   : > { %677 = vst [vmem:[%s1197_s17 + $0x38] sm:$0xff] %v661_v42 }
  0xed   : > { %684 = vst [vmem:[%s1197_s17 + $0x70] sm:$0xff] %v668_v43 }
  0xef   : > { %v628_v29 = vpop.f32.mrf.mxu2  ;;  %v651_v44 = vpop.f32.mrf.mxu3 }
  0xf0   : > { %v629_v45 = vadd.f32 %v628_v29, %v1200_v35  ;;  %v652_v46 = vadd.f32 %v651_v44, %v1200_v35 }
  0xf2   : > { %v669_v47 = vpack.c.bf16 %v652_v46, %v629_v45 }
  0xf4   : > { %685 = vst [vmem:[%s1197_s17 + $0x78] sm:$0xff] %v669_v47 }
  0xf5   : > { %946 = shalt.err (!%p943_p4)
}
  0xf6   : > { %s988_s26 = smov 1024   ;;  %s989_s9 = smov 64  }
  0xf7   : > { %841 = dma.vmem_to_hbm [thread:$0]  (%p1060_p11), %s700_s28, 2048, %s702_s29, %s687_s16, %s988_s26, %s988_s26, %s989_s9  }
  0xf8 PF: > { %s716_s10 = sand.u32 1, %s973_s12   ;;  %p1290_p7 = scmp.ge.s32.totalorder %s985_s15, 2 }
  0xf9   : > { %s717_s11 = scalar_lea.sflag [#allocation4], %s716_s10 }
  0xfa   : > { %p848_p5 = pnand %p1290_p7, %p1064_p12 }
  0xfc   : > { %p849_p8 = pneg %p848_p5 }
  0xfe   : > { %968 = dma.done.wait (%p849_p8), %s717_s11, 2048  }
  0xff   : > { %970 = vsyncadd (%p849_p8), %s717_s11, 4294965248  ;;  %p16_p10 = scmp.ge.s32.totalorder %s1035_s18, 4   ;;  %s1291_s12 = smov %s977_s13 }
 0x100   : > { %s1292_s13 = smov %s981_s14  ;;  %s1293_s14 = smov %s1047_s21 }
 0x101   : > { %s1294_s15 = smov %s1035_s18  ;;  %18 = sbr.rel (!%p16_p10) target bundleno = 5 (0x5), region = 80 }
 0x106   :  { %723 = vsyncpa [#allocation3], 1 }
 0x107   :  { %725 = vsyncpa [#allocation3 + $0x1], 1 }
 0x108   :  { %726 = vsyncpa [#allocation4], 1 }
 0x109   :  { %728 = vsyncpa [#allocation4 + $0x1], 1 }

</bundles_post_ra>
